<compile_context>
chip_gen: v7x
topology: tpu7x:2x2x1
jax: 0.10.0
libtpu: 0.0.40
codegen_flags: <defaults>
</compile_context>

<pallas_src>
import functools

import jax
import jax.numpy as jnp
from jax.experimental import pallas as pl
from jax.experimental.pallas import tpu as pltpu


# ---------------------------------------------------------------------------
# Hardware-aware tiling defaults
# ---------------------------------------------------------------------------

_TM = 512  # row-tile target for all GEMM/LN kernels (same on v5e/v6e/v7x; working set is small)


def _vmem_limit_bytes():
    """Scoped-VMEM limit: generous, but below the physical size of this generation."""
    vmem = 64 * 1024 * 1024                      # conservative fallback (v7x physical size)
    try:
        vmem = pltpu.get_tpu_info().vmem_capacity_bytes
    except Exception:
        pass
    if vmem <= 64 * 1024 * 1024:                 # v7x: 64 MiB physical
        return 48 * 1024 * 1024
    return 96 * 1024 * 1024                      # v5e / v6e: 128 MiB physical


_VMEM_LIMIT = _vmem_limit_bytes()


def _cparams(dimension_semantics):
    return pltpu.CompilerParams(dimension_semantics=dimension_semantics,
                                vmem_limit_bytes=_VMEM_LIMIT)


def _pick_row_tile(M, target=_TM):
    """Row (sublane-dim) tile: a multiple of 8 that divides M, <= target, and leaving at
    least 2 blocks when possible (so both v7x TensorCores get work); else the full dim."""
    cap = min(M, target)
    if M > 8:
        cap = min(cap, max(8, M // 2))           # >= 2 blocks along the parallel axis
    t = (cap // 8) * 8
    while t >= 8:
        if M % t == 0:
            return t
        t -= 8
    return M                                     # full dim is always a legal block shape


def _heads_per_group(num_heads, head_dim):
    """Group heads so each attention block is lane-dense (>=128 lanes, or the full H)."""
    g = min(num_heads, max(1, 128 // head_dim))
    while num_heads % g:
        g -= 1
    if (g * head_dim) % 128 != 0:
        g = num_heads                            # block covers full H -> always a legal block
    return g


# ---------------------------------------------------------------------------
# Pallas kernels
# ---------------------------------------------------------------------------

def _qkv_kernel(x_ref, wq_ref, wk_ref, wv_ref, bq_ref, bk_ref, bv_ref,
                q_ref, k_ref, v_ref):
    """Fused Q/K/V projection: one activation tile read, three full-K MXU dots, three stores."""
    x = x_ref[...]
    q_ref[...] = (jnp.dot(x, wq_ref[...], preferred_element_type=jnp.float32)
                  + bq_ref[...]).astype(q_ref.dtype)
    k_ref[...] = (jnp.dot(x, wk_ref[...], preferred_element_type=jnp.float32)
                  + bk_ref[...]).astype(k_ref.dtype)
    v_ref[...] = (jnp.dot(x, wv_ref[...], preferred_element_type=jnp.float32)
                  + bv_ref[...]).astype(v_ref.dtype)


def _mm_bias_res_ln_kernel(x_ref, w_ref, b_ref, r_ref, g_ref, beta_ref, o_ref, *, eps):
    """Fused: full-K matmul + bias + residual add + LayerNorm (full-H row per block, f32 stats)."""
    y = jnp.dot(x_ref[...], w_ref[...], preferred_element_type=jnp.float32)
    y = y + b_ref[...] + r_ref[...].astype(jnp.float32)
    mu = jnp.mean(y, axis=-1, keepdims=True)
    var = jnp.mean(jnp.square(y - mu), axis=-1, keepdims=True)
    yn = (y - mu) * jax.lax.rsqrt(var + eps)
    o_ref[...] = (yn * g_ref[...] + beta_ref[...]).astype(o_ref.dtype)


def _ffn_fused_kernel(x_ref, w1_ref, b1_ref, w2_ref, b2_ref, g_ref, beta_ref,
                      o_ref, inter_ref, *, eps):
    """Fused FFN: matmul1 + bias + GELU (VMEM intermediate) + matmul2 + bias + residual + LN."""
    x = x_ref[...]
    h = jnp.dot(x, w1_ref[...], preferred_element_type=jnp.float32) + b1_ref[...]
    # TODO(synk): tanh-approx GELU; original BERT uses the erf GELU (tiny drift).
    inter_ref[...] = jax.nn.gelu(h).astype(inter_ref.dtype)         # [tm, I] stays in VMEM
    y = jnp.dot(inter_ref[...], w2_ref[...], preferred_element_type=jnp.float32) + b2_ref[...]
    y = y + x.astype(jnp.float32)                                   # residual = FFN input
    mu = jnp.mean(y, axis=-1, keepdims=True)
    var = jnp.mean(jnp.square(y - mu), axis=-1, keepdims=True)
    yn = (y - mu) * jax.lax.rsqrt(var + eps)
    o_ref[...] = (yn * g_ref[...] + beta_ref[...]).astype(o_ref.dtype)


def _ln_kernel(x_ref, g_ref, b_ref, o_ref, *, eps):
    """LayerNorm only (embeddings); bf16 input, f32 stats."""
    x = x_ref[...].astype(jnp.float32)
    mu = jnp.mean(x, axis=-1, keepdims=True)
    var = jnp.mean(jnp.square(x - mu), axis=-1, keepdims=True)
    xn = (x - mu) * jax.lax.rsqrt(var + eps)
    o_ref[...] = (xn * g_ref[...] + b_ref[...]).astype(o_ref.dtype)


def _attn_kernel(q_ref, k_ref, v_ref, m_ref, o_ref, *, scale, head_dim, heads_per_block):
    """Masked softmax attention for a group of heads read straight out of [B,S,H] blocks."""
    # TODO(synk): add key-tiling (flash-style streaming over S) before S grows past ~1k —
    # the SxS f32 score matrix per head hits v7x's 64 MiB VMEM first.
    m = m_ref[0]                                                     # [1, S] additive key mask
    outs = []
    for h in range(heads_per_block):                                 # static unroll over heads
        lo = h * head_dim
        # Fold 1/sqrt(D) into q (bf16, SxD) instead of scaling the SxS score matrix.
        q = q_ref[0, :, lo:lo + head_dim] * scale                    # [S, D] bf16 (weak scalar)
        k = k_ref[0, :, lo:lo + head_dim]
        v = v_ref[0, :, lo:lo + head_dim]
        # Contract on D of both operands: no explicit K transpose (MXU consumes it natively).
        s = jax.lax.dot_general(q, k, (((1,), (1,)), ((), ())),
                                preferred_element_type=jnp.float32)
        s = s + m                                                    # broadcast over query rows
        s = s - jnp.max(s, axis=-1, keepdims=True)
        p = jnp.exp(s)
        l = jnp.sum(p, axis=-1, keepdims=True)                       # [S, 1]
        o = jnp.dot(p.astype(v.dtype), v, preferred_element_type=jnp.float32)
        o = o * pl.reciprocal(l, approx=True)                        # normalize AFTER PV (SxD work)
        outs.append(o.astype(o_ref.dtype))                           # bf16 before the concat
    # TODO(synk): if attention shows XLU-bound in profiles, emit a lane-aligned / head-major
    # Q/K/V layout from the QKV GEMM (permute weight columns at trace time) to kill the
    # non-128-aligned per-head lane slices.
    o_ref[0] = jnp.concatenate(outs, axis=-1)                        # lane-dense store


# ---------------------------------------------------------------------------
# Pallas-call wrappers
# ---------------------------------------------------------------------------

def qkv_projection(x, wq, wk, wv, bq, bk, bv):
    M, K = x.shape
    H = wq.shape[1]
    tm = _pick_row_tile(M)
    xspec = pl.BlockSpec((tm, K), lambda i: (i, 0))
    wspec = pl.BlockSpec((K, H), lambda i: (0, 0))    # constant index_map -> weights grid-resident
    bspec = pl.BlockSpec((1, H), lambda i: (0, 0))
    ospec = pl.BlockSpec((tm, H), lambda i: (i, 0))
    out_sh = jax.ShapeDtypeStruct((M, H), jnp.bfloat16)
    return pl.pallas_call(
        _qkv_kernel,
        out_shape=(out_sh, out_sh, out_sh),
        grid=(M // tm,),
        in_specs=[xspec, wspec, wspec, wspec, bspec, bspec, bspec],
        out_specs=(ospec, ospec, ospec),
        compiler_params=_cparams(("parallel",)),
    )(x.astype(jnp.bfloat16),
      wq.astype(jnp.bfloat16), wk.astype(jnp.bfloat16), wv.astype(jnp.bfloat16),
      bq.reshape(1, H).astype(jnp.float32),
      bk.reshape(1, H).astype(jnp.float32),
      bv.reshape(1, H).astype(jnp.float32))


def matmul_bias_residual_ln(x, w, b, residual, gamma, beta, eps=1e-12):
    M, K = x.shape
    N = w.shape[1]                                    # == H; full row per block for the LayerNorm
    tm = _pick_row_tile(M)
    row = lambda i: (i, 0)
    vec = lambda i: (0, 0)
    return pl.pallas_call(
        functools.partial(_mm_bias_res_ln_kernel, eps=eps),
        out_shape=jax.ShapeDtypeStruct((M, N), jnp.bfloat16),
        grid=(M // tm,),
        in_specs=[pl.BlockSpec((tm, K), row),
                  pl.BlockSpec((K, N), vec),          # grid-resident weight
                  pl.BlockSpec((1, N), vec),
                  pl.BlockSpec((tm, N), row),
                  pl.BlockSpec((1, N), vec),
                  pl.BlockSpec((1, N), vec)],
        out_specs=pl.BlockSpec((tm, N), row),
        compiler_params=_cparams(("parallel",)),
    )(x.astype(jnp.bfloat16), w.astype(jnp.bfloat16), b.reshape(1, N).astype(jnp.float32),
      residual.astype(jnp.bfloat16),
      gamma.reshape(1, N).astype(jnp.float32), beta.reshape(1, N).astype(jnp.float32))


def ffn_residual_ln(x, w1, b1, w2, b2, gamma, beta, eps=1e-12):
    M, H = x.shape
    I = w1.shape[1]
    tm = _pick_row_tile(M)
    row = lambda i: (i, 0)
    vec = lambda i: (0, 0)
    return pl.pallas_call(
        functools.partial(_ffn_fused_kernel, eps=eps),
        out_shape=jax.ShapeDtypeStruct((M, H), jnp.bfloat16),
        grid=(M // tm,),
        in_specs=[pl.BlockSpec((tm, H), row),
                  pl.BlockSpec((H, I), vec),          # grid-resident W1
                  pl.BlockSpec((1, I), vec),
                  pl.BlockSpec((I, H), vec),          # grid-resident W2
                  pl.BlockSpec((1, H), vec),
                  pl.BlockSpec((1, H), vec),
                  pl.BlockSpec((1, H), vec)],
        out_specs=pl.BlockSpec((tm, H), row),
        scratch_shapes=[pltpu.VMEM((tm, I), jnp.bfloat16)],   # FFN intermediate stays in VMEM
        compiler_params=_cparams(("parallel",)),
    )(x.astype(jnp.bfloat16),
      w1.astype(jnp.bfloat16), b1.reshape(1, I).astype(jnp.float32),
      w2.astype(jnp.bfloat16), b2.reshape(1, H).astype(jnp.float32),
      gamma.reshape(1, H).astype(jnp.float32), beta.reshape(1, H).astype(jnp.float32))


def layernorm(x, gamma, beta, eps=1e-12):
    M, H = x.shape
    tm = _pick_row_tile(M)
    return pl.pallas_call(
        functools.partial(_ln_kernel, eps=eps),
        out_shape=jax.ShapeDtypeStruct((M, H), jnp.bfloat16),
        grid=(M // tm,),
        in_specs=[pl.BlockSpec((tm, H), lambda i: (i, 0)),
                  pl.BlockSpec((1, H), lambda i: (0, 0)),
                  pl.BlockSpec((1, H), lambda i: (0, 0))],
        out_specs=pl.BlockSpec((tm, H), lambda i: (i, 0)),
        compiler_params=_cparams(("parallel",)),
    )(x.astype(jnp.bfloat16),                          # bf16 input: LN-only kernel is mem-bound
      gamma.reshape(1, H).astype(jnp.float32), beta.reshape(1, H).astype(jnp.float32))


def multi_head_attention(q, k, v, mask_add, num_heads):
    # q, k, v: [B, S, H] bf16 (heads are contiguous D-wide lane windows of H)
    # mask_add: [B, 1, S] f32 additive mask (0 / -10000) over keys
    B, S, H = q.shape
    D = H // num_heads
    G = _heads_per_group(num_heads, D)
    GD = G * D
    n_groups = num_heads // G
    scale = 1.0 / float(D) ** 0.5
    spec = pl.BlockSpec((1, S, GD), lambda b, g: (b, 0, g))
    mspec = pl.BlockSpec((1, 1, S), lambda b, g: (b, 0, 0))
    return pl.pallas_call(
        functools.partial(_attn_kernel, scale=scale, head_dim=D, heads_per_block=G),
        out_shape=jax.ShapeDtypeStruct((B, S, H), jnp.bfloat16),
        grid=(B, n_groups),
        in_specs=[spec, spec, spec, mspec],
        out_specs=spec,
        compiler_params=_cparams(("parallel", "parallel")),
    )(q, k, v, mask_add)


# ---------------------------------------------------------------------------
# Model glue (mini BERT encoder + Summarizer head)
# ---------------------------------------------------------------------------

def bert_embeddings(params, input_ids, segments, B, S, H):
    we = jnp.take(params["word_emb"], input_ids, axis=0)              # [B, S, H]
    pe = params["pos_emb"][:S][None, :, :]                            # [1, S, H]
    te = jnp.take(params["type_emb"], segments, axis=0)               # [B, S, H]
    emb = (we + pe + te).reshape(B * S, H)
    out = layernorm(emb, params["emb_ln_g"], params["emb_ln_b"])      # bf16 out
    return out.reshape(B, S, H)


def bert_layer(h, p, mask_add, B, S, H, nh):
    x = h.reshape(B * S, H)                                           # bf16

    q, k, v = qkv_projection(x, p["q_w"], p["k_w"], p["v_w"], p["q_b"], p["k_b"], p["v_b"])
    ctx = multi_head_attention(q.reshape(B, S, H), k.reshape(B, S, H), v.reshape(B, S, H),
                               mask_add, nh).reshape(B * S, H)

    # attention output projection + residual + LayerNorm, fused
    h1 = matmul_bias_residual_ln(ctx, p["o_w"], p["o_b"], x, p["ln1_g"], p["ln1_b"])

    # FFN1 (GELU) + FFN2 + residual + LayerNorm, fused (intermediate never touches HBM)
    h2 = ffn_residual_ln(h1, p["i_w"], p["i_b"], p["f_w"], p["f_b"], p["ln2_g"], p["ln2_b"])
    return h2.reshape(B, S, H)


def summarizer_forward(params, cfg, input_ids, attention_mask, segments, cls_ids, cls_mask):
    B, S = input_ids.shape
    H, nh = cfg["hidden"], cfg["heads"]

    # (1 - mask) * -10000 additive attention mask over keys, as in BertModel
    mask_add = ((1.0 - attention_mask.astype(jnp.float32)) * -10000.0).reshape(B, 1, S)

    h = bert_embeddings(params, input_ids, segments, B, S, H)
    for lyr in params["layers"]:
        h = bert_layer(h, lyr, mask_add, B, S, H, nh)
    encoded = h                                                       # [B, S, H] bf16
    # BertModel also returns a pooled [CLS] output; Summarizer.forward discards it.

    # sents_vec = encoded_input[indexer, cls_ids]  (data-dependent gather -> plain JAX)
    sents_vec = encoded[jnp.arange(B)[:, None], cls_ids].astype(jnp.float32)   # [B, Ncls, H]

    # Classifier: [*, H] @ [H, 1] + sigmoid. Output lane width is 1 (lane-sparse) and the
    # matmul is tiny, so per the perf review this stays in XLA instead of a pallas_call.
    logits = jnp.einsum("bnh,ho->bno", sents_vec, params["cls_w"]) + params["cls_b"]
    sent_scores = jax.nn.sigmoid(logits[..., 0])                      # [B, Ncls], f32
    return sent_scores, cls_mask


# ---------------------------------------------------------------------------
# Deterministic parameter initialization (synthetic mini-BERT config)
# ---------------------------------------------------------------------------

def init_params(key, cfg):
    H, I, L = cfg["hidden"], cfg["intermediate"], cfg["layers"]
    V, P = cfg["vocab"], cfg["max_pos"]

    def nrm(k, shape, scale=0.02):
        return scale * jax.random.normal(k, shape, dtype=jnp.float32)

    keys = jax.random.split(key, 8 + L)
    params = {
        "word_emb": nrm(keys[0], (V, H)),
        "pos_emb": nrm(keys[1], (P, H)),
        "type_emb": nrm(keys[2], (2, H)),
        "emb_ln_g": jnp.ones((H,), jnp.float32),
        "emb_ln_b": jnp.zeros((H,), jnp.float32),
        # decoder (Classifier) params: nn.init.uniform_(p, -0.1, 0.1)
        "cls_w": jax.random.uniform(keys[3], (H, 1), jnp.float32, -0.1, 0.1),
        "cls_b": jax.random.uniform(keys[4], (1,), jnp.float32, -0.1, 0.1),
        "layers": [],
    }
    for l in range(L):
        lk = jax.random.split(keys[8 + l], 6)
        params["layers"].append({
            "q_w": nrm(lk[0], (H, H)), "q_b": jnp.zeros((H,), jnp.float32),
            "k_w": nrm(lk[1], (H, H)), "k_b": jnp.zeros((H,), jnp.float32),
            "v_w": nrm(lk[2], (H, H)), "v_b": jnp.zeros((H,), jnp.float32),
            "o_w": nrm(lk[3], (H, H)), "o_b": jnp.zeros((H,), jnp.float32),
            "ln1_g": jnp.ones((H,), jnp.float32), "ln1_b": jnp.zeros((H,), jnp.float32),
            "i_w": nrm(lk[4], (H, I)), "i_b": jnp.zeros((I,), jnp.float32),
            "f_w": nrm(lk[5], (I, H)), "f_b": jnp.zeros((H,), jnp.float32),
            "ln2_g": jnp.ones((H,), jnp.float32), "ln2_b": jnp.zeros((H,), jnp.float32),
        })
    return params


if __name__ == "__main__":
    cfg = dict(hidden=32, heads=2, layers=2, intermediate=64, vocab=64, max_pos=32)
    B, S, Ncls = 2, 16, 4

    key = jax.random.PRNGKey(0)
    k_par, k_ids, k_seg = jax.random.split(key, 3)

    params = init_params(k_par, cfg)

    input_ids = jax.random.randint(k_ids, (B, S), 0, cfg["vocab"], dtype=jnp.int32)
    attention_mask = jnp.concatenate(
        [jnp.ones((B, S - 4), jnp.float32),
         jnp.array([[1.0] * 4, [0.0] * 4], jnp.float32)], axis=1)     # pad last 4 of sample 1
    segments = (jnp.arange(S)[None, :] >= (S // 2)).astype(jnp.int32).repeat(B, axis=0)
    cls_ids = jnp.array([[0, 3, 7, 11], [0, 4, 8, 11]], dtype=jnp.int32)   # [B, Ncls]
    cls_mask = jnp.array([[1.0, 1.0, 1.0, 1.0], [1.0, 1.0, 1.0, 0.0]], dtype=jnp.float32)

    sent_scores, cls_mask_out = summarizer_forward(
        params, cfg, input_ids, attention_mask, segments, cls_ids, cls_mask)
    jax.block_until_ready((sent_scores, cls_mask_out))

    assert sent_scores.shape == (B, Ncls)
    assert cls_mask_out.shape == (B, Ncls)
    assert bool(jnp.all(jnp.isfinite(sent_scores)))
    assert bool(jnp.all((sent_scores >= 0.0) & (sent_scores <= 1.0)))
    print("KERNEL_OK")
</pallas_src>

<mosaic_0001>
module attributes {stable_mosaic.version = 11 : i64} {
  func.func @_ln_kernel(%arg0: i32, %arg1: memref<16x32xbf16, #tpu.memory_space<vmem>>, %arg2: memref<1x32xf32, #tpu.memory_space<vmem>>, %arg3: memref<1x32xf32, #tpu.memory_space<vmem>>, %arg4: memref<16x32xbf16, #tpu.memory_space<vmem>>) attributes {dimension_semantics = [#tpu.dimension_semantics<parallel>], iteration_bounds = array<i64: 2>, scalar_prefetch = 0 : i64, scratch_operands = 0 : i64, tpu.core_type = #tpu.core_type<tc>, window_params = [{transform_indices = @transform_0, window_bounds = array<i64: 16, 32>}, {pipeline_mode = #tpu.pipeline_mode<synchronous>, transform_indices = @transform_1, window_bounds = array<i64: 1, 32>}, {pipeline_mode = #tpu.pipeline_mode<synchronous>, transform_indices = @transform_2, window_bounds = array<i64: 1, 32>}, {transform_indices = @transform_3, window_bounds = array<i64: 16, 32>}]} {
    %c0 = arith.constant 0 : index
    %c0_0 = arith.constant 0 : index
    %0 = vector.load %arg1[%c0, %c0_0] : memref<16x32xbf16, #tpu.memory_space<vmem>>, vector<16x32xbf16>
    %1 = arith.extf %0 : vector<16x32xbf16> to vector<16x32xf32>
    %cst = arith.constant dense<0.000000e+00> : vector<16xf32>
    %2 = vector.multi_reduction <add>, %1, %cst [1] : vector<16x32xf32> to vector<16xf32>
    %3 = vector.shape_cast %2 : vector<16xf32> to vector<16x1xf32>
    %cst_1 = arith.constant 3.200000e+01 : f32
    %4 = vector.broadcast %cst_1 : f32 to vector<16x1xf32>
    %5 = arith.divf %3, %4 : vector<16x1xf32>
    %6 = vector.broadcast %5 : vector<16x1xf32> to vector<16x32xf32>
    %7 = arith.subf %1, %6 : vector<16x32xf32>
    %8 = arith.mulf %7, %7 : vector<16x32xf32>
    %cst_2 = arith.constant dense<0.000000e+00> : vector<16xf32>
    %9 = vector.multi_reduction <add>, %8, %cst_2 [1] : vector<16x32xf32> to vector<16xf32>
    %10 = vector.shape_cast %9 : vector<16xf32> to vector<16x1xf32>
    %cst_3 = arith.constant 3.200000e+01 : f32
    %11 = vector.broadcast %cst_3 : f32 to vector<16x1xf32>
    %12 = arith.divf %10, %11 : vector<16x1xf32>
    %13 = vector.broadcast %5 : vector<16x1xf32> to vector<16x32xf32>
    %14 = arith.subf %1, %13 : vector<16x32xf32>
    %cst_4 = arith.constant 9.99999996E-13 : f32
    %15 = vector.broadcast %cst_4 : f32 to vector<16x1xf32>
    %16 = arith.addf %12, %15 : vector<16x1xf32>
    %17 = math.rsqrt %16 : vector<16x1xf32>
    %18 = vector.broadcast %17 : vector<16x1xf32> to vector<16x32xf32>
    %19 = arith.mulf %14, %18 : vector<16x32xf32>
    %c0_5 = arith.constant 0 : index
    %c0_6 = arith.constant 0 : index
    %20 = vector.load %arg2[%c0_5, %c0_6] : memref<1x32xf32, #tpu.memory_space<vmem>>, vector<1x32xf32>
    %21 = vector.broadcast %20 : vector<1x32xf32> to vector<16x32xf32>
    %22 = arith.mulf %19, %21 : vector<16x32xf32>
    %c0_7 = arith.constant 0 : index
    %c0_8 = arith.constant 0 : index
    %23 = vector.load %arg3[%c0_7, %c0_8] : memref<1x32xf32, #tpu.memory_space<vmem>>, vector<1x32xf32>
    %24 = vector.broadcast %23 : vector<1x32xf32> to vector<16x32xf32>
    %25 = arith.addf %22, %24 : vector<16x32xf32>
    %26 = arith.truncf %25 : vector<16x32xf32> to vector<16x32xbf16>
    %c0_9 = arith.constant 0 : index
    %c0_10 = arith.constant 0 : index
    %27 = vector.load %arg4[%c0_9, %c0_10] : memref<16x32xbf16, #tpu.memory_space<vmem>>, vector<16x32xbf16>
    tpu.vector_store %arg4[%c0_9, %c0_10], %26 {strides = array<i32>} : memref<16x32xbf16, #tpu.memory_space<vmem>>, vector<16x32xbf16>,
    return
  }
  func.func @transform_0(%arg0: i32) -> (i32, i32) {
    %c0_i32 = arith.constant 0 : i32
    %c0_i32_0 = arith.constant 0 : i32
    return %arg0, %c0_i32 : i32, i32
  }
  func.func @transform_1(%arg0: i32) -> (i32, i32) {
    %c0_i32 = arith.constant 0 : i32
    %c0_i32_0 = arith.constant 0 : i32
    %c0_i32_1 = arith.constant 0 : i32
    return %c0_i32, %c0_i32_0 : i32, i32
  }
  func.func @transform_2(%arg0: i32) -> (i32, i32) {
    %c0_i32 = arith.constant 0 : i32
    %c0_i32_0 = arith.constant 0 : i32
    %c0_i32_1 = arith.constant 0 : i32
    return %c0_i32, %c0_i32_0 : i32, i32
  }
  func.func @transform_3(%arg0: i32) -> (i32, i32) {
    %c0_i32 = arith.constant 0 : i32
    %c0_i32_0 = arith.constant 0 : i32
    return %arg0, %c0_i32 : i32, i32
  }
}

</mosaic_0001>

<bundles_post_ra>
// kernel: tpu_custom_call.1
= control target key start
LH: loop header
LB: loop body
LE: loop exit
PB: predicated region body
PF: predicated region fallthrough
CT: control target
= control target key end

     0   :  { %8 = vsyncpa [#allocation3], 0  ;;  %s719_s0 = inlined_call_operand.hbm [shape: bf16[32,32], index: 0, kind: input, shape index: {}]   ;;  %s720_s1 = inlined_call_operand.vmem [shape: f32[1,32], index: 1, kind: input, shape index: {}]   ;;  %s721_s2 = inlined_call_operand.vmem [shape: f32[1,32], index: 2, kind: input, shape index: {}]   ;;  %s722_s3 = inlined_call_operand.hbm [shape: bf16[32,32], index: 3, kind: output, shape index: {}]  }
   0x1   :  { %10 = vsyncpa [#allocation3 + $0x1], 0 }
   0x2   :  { %11 = vsyncpa [#allocation4], 0 }
   0x3   :  { %13 = vsyncpa [#allocation4 + $0x1], 0  ;;  %s543_s12 = smov 0   ;;  %s545_s13 = smov 0  }
   0x4   :  { %s547_s14 = smov 0   ;;  %s549_s15 = smov 0  }
   0x5 LB: > { %s564_s16 = sadd.s32 4294967295, %s515_s15   ;;  %s339_s17 = sadd.s32 4294967294, %s515_s15   ;;  %s515_s15 = sphi %s549_s15, %s735_s15   ;;  %s511_s14 = sphi %s547_s14, %s734_s14   ;;  %s507_s13 = sphi %s545_s13, %s733_s13   ;;  %s503_s12 = sphi %s543_s12, %s732_s12  }
   0x6   : > { %s568_s18 = sadd.s32 1, %s515_s15   ;;  %s26_s19 = sadd.s32 1, %s511_s14 }
   0x7   : > { %s23_s20 = ssub.s32 %s515_s15, %s568_s18  ;;  %p33_p0 = scmp.ne.s32.totalorder %s511_s14, %s507_s13 }
   0x8   : > { %p24_p1 = scmp.eq.s32.totalorder %s23_s20, 0  ;;  %p34_p2 = scmp.eq.s32.totalorder %s515_s15, 0 }
   0x9   : > { %p39_p3 = scmp.ne.s32.totalorder %s507_s13, %s503_s12  ;;  %p40_p4 = scmp.eq.s32.totalorder %s564_s16, 0 }
   0xa   : > { %s580_s21 = scalar_select %p24_p1, %s511_s14, %s26_s19  }
   0xb   : > { %p582_p5 = por %p34_p2, %p33_p0  ;;  %p586_p6 = por %p40_p4, %p39_p3 }
   0xc   : > { %p105_p7 = scmp.eq.s32.totalorder %s564_s16, 1  ;;  %p111_p8 = scmp.eq.s32.totalorder %s339_s17, 1 }
   0xd   : > { %p377_p10 = scmp.lt.s32.totalorder %s515_s15, 2  ;;  %s137_s26 = sand.u32 1, %s511_s14  }
   0xe   : > { %p593_p11 = por %p105_p7, %p33_p0  ;;  %p597_p12 = por %p111_p8, %p39_p3 }
   0xf   : > { %s357_s27 = sshll.u32 %s515_s15, 7  ;;  %s342_s28 = sshll.u32 %s137_s26, 3 }
  0x10   : > { %s726_s24 = scalar_select %p593_p11, 1, 0 }
  0x11   : > { %s727_s25 = scalar_select %p597_p12, 1, 0 }
  0x12   : > { %s606_s4 = scalar_lea.hbm %s719_s0, %s357_s27  ;;  %s141_s5 = scalar_lea.vmem [#allocation2], %s342_s28 }
  0x13   : > { %s148_s6 = sshll.u32 %s141_s5, 4  ;;  %p610_p13 = pnand %p377_p10, %p582_p5  ;;  %s614_s6 = int_to_ptr.vmem [resolvable:$true] %s148_s6 }
  0x14   : > { %s616_s8 = scalar_lea.sflag [#allocation3], %s137_s26  ;;  %s419_s9 = scalar_lea.hbm %s606_s4, 128 }
  0x15   : > { %p420_p0 = scmp.ne.s32.totalorder %s606_s4, %s419_s9  ;;  %p421_p1 = pneg %p610_p13 }
  0x16   : > { %s424_s17 = scalar_lea.hbm %s719_s0, 256  ;;  %p425_p4 = scmp.lt.u32.totalorder %s606_s4, %s719_s0 }
  0x17   : > { %p422_p2 = pnand %p421_p1, %p420_p0  ;;  %p426_p5 = scmp.lt.u32.totalorder %s424_s17, %s419_s9 }
  0x18   : > { %p428_p8 = scmp.lt.u32.totalorder %s419_s9, %s606_s4 }
  0x19   : > { %p423_p3 = pneg %p422_p2  ;;  %p427_p7 = por %p426_p5, %p425_p4 }
  0x1b   : > { %p429_p10 = por %p428_p8, %p427_p7 }
  0x1d   : > { %p430_p9 = pnand %p429_p10, %p423_p3 }
  0x1f   : > { %433 = shalt.err (!%p430_p9)
}
  0x20   : > { %s434_s22 = scalar_lea.vmem %s614_s6, 128  ;;  %s517_s26 = smov [#allocation2]  }
  0x21   : > { %p435_p0 = scmp.ne.s32.totalorder %s614_s6, %s434_s22  ;;  %s439_s27 = sshll.u32 %s517_s26, 4  ;;  %s440_s27 = int_to_ptr.vmem [resolvable:$false] %s439_s27 }
  0x22   : > { %s441_s28 = scalar_lea.vmem %s440_s27, 256  ;;  %p442_p11 = scmp.lt.s32.totalorder %s614_s6, %s440_s27 }
  0x23   : > { %p437_p2 = pnand %p435_p0, %p421_p1  ;;  %p443_p4 = scmp.lt.s32.totalorder %s441_s28, %s434_s22 }
  0x25   : > { %p438_p12 = pneg %p437_p2  ;;  %p444_p5 = por %p443_p4, %p442_p11 }
  0x27   : > { %p445_p7 = pnand %p444_p5, %p438_p12 }
  0x29   : > { %448 = shalt.err (!%p445_p7)
}
  0x2a   : > { %s518_s29 = smov 64   ;;  %s519_s30 = smov 4  }
  0x2b   : > { %372 = dma.hbm_to_vmem [thread:$0]  (!%p610_p13), %s606_s4, 128, %s614_s6, %s616_s8, %s518_s29, %s518_s29, %s519_s30  }
  0x2c   : > { %p345_p9 = scmp.ge.s32.totalorder %s515_s15, 1  ;;  %p156_p1 = scmp.lt.s32.totalorder %s515_s15, 3 }
  0x2e   : > { %p157_p3 = pnand %p345_p9, %p156_p1 }
  0x2f   : > { %s647_s5 = sand.u32 (!%p157_p3), 1, %s507_s13  }
  0x30   : > { %160 = sbr.rel (%p157_p3) target bundleno = 393 (0x189), region = 32  ;;  %s346_s9 = sshll.u32 (!%p157_p3), %s647_s5, 3 }
  0x31   : > { %s163_s10 = scalar_lea.sflag (!%p157_p3), [#allocation3], %s647_s5  ;;  %s166_s11 = scalar_lea.vmem (!%p157_p3), [#allocation2], %s346_s9 }
  0x37   : > { %494 = dma.done.wait (%p586_p6), %s163_s10, 128  }
  0x38   : > { %496 = vsyncadd (%p586_p6), %s163_s10, 4294967168  ;;  %v362_v0 = vld [vmem:[%s166_s11] sm:$0xff]   ;;  %vm195_vm0 = vcmask 261120   ;;  %vm249_vm1 = vcmask 257024   ;;  %s360_s8 = sshll.u32 %s564_s16, 7  ;;  %s188_s17 = scalar_lea.vmem [#allocation5], %s346_s9 }
  0x39   : > { %v363_v1 = vunpack.c.l.bf16 %v362_v0  ;;  %v364_v2 = vunpack.c.h.bf16 %v362_v0  ;;  %v348_v22 = vld [vmem:[%s720_s1] ss:$0 sm:$0xff]  ;;  %s266_s19 = sshll.u32 %s188_s17, 4  ;;  %s673_s26 = scalar_lea.hbm %s722_s3, %s360_s8  ;;  %s675_s19 = int_to_ptr.vmem [resolvable:$true] %s266_s19 }
  0x3a   : > { %v349_v24 = vld [vmem:[%s721_s2] ss:$0 sm:$0xff]  ;;  %s253_s27 = scalar_lea.sflag [#allocation4], %s647_s5  ;;  %s449_s28 = scalar_lea.vmem %s675_s19, 128 }
  0x3b   : > { %v196_v3 = vsel %vm195_vm0, %v363_v1, 0.0  ;;  %v199_v4 = vsel %vm195_vm0, %v364_v2, 0.0  ;;  %p450_p6 = scmp.ne.s32.totalorder %s675_s19, %s449_s28  ;;  %p729_p11 = scmp.ne.s32.totalorder %s726_s24, 0 }
  0x3c   : > { %197 = vadd.xlane.f32.xlu0 %v196_v3  ;;  %s520_s16 = smov [#allocation5]  }
  0x3d   : > { %p451_p12 = pnand %p450_p6, %p729_p11  ;;  %s453_s29 = sshll.u32 %s520_s16, 4  ;;  %s454_s29 = int_to_ptr.vmem [resolvable:$false] %s453_s29 }
  0x3e   : > { %s455_s30 = scalar_lea.vmem %s454_s29, 256  ;;  %p456_p8 = scmp.lt.s32.totalorder %s675_s19, %s454_s29 }
  0x3f   : > { %p452_p13 = pneg %p451_p12  ;;  %p457_p10 = scmp.lt.s32.totalorder %s455_s30, %s449_s28 }
  0x40   : > { %200 = vadd.xlane.f32.xlu0 %v199_v4 }
  0x41   : > { %p458_p0 = por %p457_p10, %p456_p8 }
  0x43   : > { %p459_p2 = pnand %p458_p0, %p452_p13 }
  0xc9   : > { %v198_v5 = vpop.xlane.xlu0 %197 }
  0xca   : > { %v203_v6 = vmul.f32 0.03125, %v198_v5 }
  0xcc   : > { %v205_v7 = vsub.f32 %v363_v1, %v203_v6 }
  0xcd   : > { %v201_v8 = vpop.xlane.xlu0 %200 }
  0xce   : > { %v204_v9 = vmul.f32 0.03125, %v201_v8  ;;  %v207_v10 = vmul.f32 %v205_v7, %v205_v7 }
  0xd0   : > { %v206_v11 = vsub.f32 %v364_v2, %v204_v9  ;;  %v209_v12 = vsel %vm195_vm0, %v207_v10, 0.0 }
  0xd1   : > { %210 = vadd.xlane.f32.xlu1 %v209_v12 }
  0xd2   : > { %v208_v13 = vmul.f32 %v206_v11, %v206_v11 }
  0xd4   : > { %v212_v14 = vsel %vm195_vm0, %v208_v13, 0.0 }
  0xd5   : > { %213 = vadd.xlane.f32.xlu1 %v212_v14 }
 0x15e   : > { %v211_v15 = vpop.xlane.xlu1 %210 }
 0x15f   : > { %v215_v16 = vmul.f32 0.03125, %v211_v15 }
 0x161   : > { %v217_v17 = vadd.f32 1e-12, %v215_v16 }
 0x162   : > { %v214_v18 = vpop.xlane.xlu1 %213 }
 0x163   : > { %415 = vrsqrt.f32 %v217_v17  ;;  %v216_v19 = vmul.f32 0.03125, %v214_v18 }
 0x165   : > { %v218_v20 = vadd.f32 1e-12, %v216_v19 }
 0x167   : > { %417 = vrsqrt.f32 %v218_v20 }
 0x16d   : > { %v416_v21 = vpop.eup %415 }
 0x16e   : > { %v221_v23 = vmul.f32 %v416_v21, %v205_v7 }
 0x170   : > { %v230_v25 = vmul.f32 %v348_v22, %v221_v23 }
 0x171   : > { %v418_v26 = vpop.eup %417 }
 0x172   : > { %v239_v27 = vadd.f32 %v349_v24, %v230_v25  ;;  %v222_v28 = vmul.f32 %v418_v26, %v206_v11 }
 0x174   : > { %v358_v29 = vpack.c.bf16 %v239_v27, %v239_v27  ;;  %v231_v30 = vmul.f32 %v348_v22, %v222_v28 }
 0x176   : > { %v240_v31 = vadd.f32 %v349_v24, %v231_v30  ;;  %250 = vst.msk [vmem:[%s188_s17] sm:$0xf] %vm249_vm1, %v358_v29 }
 0x178   : > { %v359_v32 = vpack.c.bf16 %v240_v31, %v240_v31 }
 0x17a   : > { %251 = vst.msk [vmem:[%s188_s17 + $0x4] sm:$0xf] %vm249_vm1, %v359_v32 }
 0x17b   : > { %462 = shalt.err (!%p459_p2)
}
 0x17c   : > { %s463_s9 = scalar_lea.hbm %s673_s26, 128  ;;  %s467_s23 = scalar_lea.hbm %s722_s3, 256 }
 0x17d   : > { %p464_p4 = scmp.ne.s32.totalorder %s673_s26, %s463_s9  ;;  %p468_p9 = scmp.lt.u32.totalorder %s673_s26, %s722_s3 }
 0x17e   : > { %p469_p1 = scmp.lt.u32.totalorder %s467_s23, %s463_s9  ;;  %p471_p6 = scmp.lt.u32.totalorder %s463_s9, %s673_s26 }
 0x17f   : > { %p465_p5 = pnand %p464_p4, %p729_p11 }
 0x180   : > { %p470_p3 = por %p469_p1, %p468_p9 }
 0x181   : > { %p466_p7 = pneg %p465_p5 }
 0x182   : > { %p472_p12 = por %p471_p6, %p470_p3 }
 0x184   : > { %p473_p13 = pnand %p472_p12, %p466_p7 }
 0x186   : > { %476 = shalt.err (!%p473_p13)
}
 0x187   : > { %s521_s7 = smov 64   ;;  %s522_s8 = smov 4  }
 0x188   : > { %367 = dma.vmem_to_hbm [thread:$0]  (%p729_p11), %s675_s19, 128, %s673_s26, %s253_s27, %s521_s7, %s521_s7, %s522_s8  }
 0x189 PF: > { %s281_s17 = sand.u32 1, %s503_s12   ;;  %p730_p8 = scmp.ne.s32.totalorder %s727_s25, 0 }
 0x18a   : > { %p731_p10 = scmp.ge.s32.totalorder %s515_s15, 2  ;;  %s282_s20 = scalar_lea.sflag [#allocation4], %s281_s17 }
 0x18c   : > { %p374_p0 = pnand %p731_p10, %p730_p8 }
 0x18e   : > { %498 = dma.done.wait (!%p374_p0), %s282_s20, 128  }
 0x18f   : > { %500 = vsyncadd (!%p374_p0), %s282_s20, 4294967168  ;;  %p16_p2 = scmp.ge.s32.totalorder %s568_s18, 4   ;;  %s732_s12 = smov %s507_s13 }
 0x190   : > { %s733_s13 = smov %s511_s14  ;;  %s734_s14 = smov %s580_s21 }
 0x191   : > { %s735_s15 = smov %s568_s18  ;;  %18 = sbr.rel (!%p16_p2) target bundleno = 5 (0x5), region = 77 }
 0x198   :  { %287 = vsyncpa [#allocation3], 1 }
 0x199   :  { %289 = vsyncpa [#allocation3 + $0x1], 1 }
 0x19a   :  { %290 = vsyncpa [#allocation4], 1 }
 0x19b   :  { %292 = vsyncpa [#allocation4 + $0x1], 1 }

</bundles_post_ra>
